<compile_context>
chip_gen: v7x
topology: tpu7x:2x2x1
jax: 0.10.0
libtpu: 0.0.40
codegen_flags: <defaults>
</compile_context>

<pallas_src>
from functools import partial

import jax
import jax.numpy as jnp
from jax.experimental import pallas as pl
from jax.experimental.pallas import tpu as pltpu


def heuristic_policy_kernel(slab_ref, preT_ref, w1p_ref, w1s_ref, w2_ref, w3_ref, out_ref):
    # ---- masked mean / unbiased std of cpt and children, lane-major reduction ----
    slab = slab_ref[...]                                   # [3, L]: cpt*mask | children*mask | mask
    sums = jnp.sum(slab, axis=1, keepdims=True)            # [3, 1] single XLU lane reduce
    n = jnp.maximum(sums[2:3, :], 1.0)                     # active-stage count, guard n == 0
    nm1 = jnp.maximum(n - 1.0, 1.0)                        # guard n == 1 (torch.std is ddof=1)
    means = sums[0:2, :] / n                                # [2, 1]  (mean_cpt, mean_children)
    diffs = (slab[0:2, :] - means) * slab[2:3, :]           # re-mask so padded/inactive rows drop
    stds = jnp.sqrt(jnp.sum(diffs * diffs, axis=1, keepdims=True) / nm1)   # [2, 1]

    # stat vector [mean_cpt, mean_children, std_cpt, std_children, 1]; the trailing 1 makes
    # the single stat dot also add b1.
    stat5 = jnp.concatenate([means, stds, jnp.ones((1, 1), jnp.float32)], axis=0)   # [5, 1]

    # ---- transposed MLP score head: activations are [hidden, R] (R on lanes) ----
    h = jnp.dot(w1p_ref[...], preT_ref[...], preferred_element_type=jnp.float32)    # [H1, R]
    h = h + jnp.dot(w1s_ref[...], stat5, preferred_element_type=jnp.float32)        # + stats + b1
    h = jnp.maximum(h, 0.0)                                                          # ReLU

    w2 = w2_ref[...]                                        # [H2, H1+1] (last column = b2)
    k1 = w2.shape[1] - 1
    h = jnp.dot(w2[:, :k1], h, preferred_element_type=jnp.float32) + w2[:, k1:]      # [H2, R]
    h = jnp.maximum(h, 0.0)

    w3 = w3_ref[...]                                        # [1, H2+1]  (last column = b3)
    k2 = w3.shape[1] - 1
    out_ref[...] = jnp.dot(w3[:, :k2], h, preferred_element_type=jnp.float32) + w3[:, k2:]


@partial(jax.jit, static_argnames=("num_heuristics",))
def heuristic_policy_forward(params, x_nodes, stage_mask, h_glob, num_heuristics):
    """Equivalent of HeuristicPolicyNetwork.forward with all features enabled."""
    B, G = h_glob.shape
    H = num_heuristics
    R = B * H
    E = params['heuristic_emb'].shape[1]
    N = x_nodes.shape[0]

    # ----- glue: feature assembly (no FLOPs), built directly transposed -----
    mask_f = stage_mask.astype(jnp.float32)
    num_queue = jnp.minimum(jnp.sum(stage_mask.astype(jnp.int32)), 1000)
    # TODO(synk): data-dependent single-row embedding gather stays in JAX glue
    nq_emb = params['num_queue_emb'][num_queue]                              # [3]

    h_globT = jnp.repeat(h_glob.T, H, axis=1)                                # [G, R] col r = glob[r//H]
    nqT = jnp.broadcast_to(nq_emb[:, None], (3, R))                          # [3, R]
    heurT = jnp.repeat(params['heuristic_emb'].T, B, axis=1)                 # [E, R] col r = heur[r//B]
    preT = jnp.concatenate([h_globT, nqT, heurT], axis=0)                    # [G+3+E, R]

    # lane-major reduction slab: rows = cpt*mask | children*mask | mask, padded to 128-lane mult
    LPAD = max(128, ((N + 127) // 128) * 128)
    slab = jnp.stack([x_nodes[:, 5] * mask_f, x_nodes[:, 6] * mask_f, mask_f], axis=0)
    slab = jnp.pad(slab.astype(jnp.float32), ((0, 0), (0, LPAD - N)))        # [3, LPAD]

    # Full-input column layout of W1: glob(0:G) | nq(G:G+3) | cpt_mean | cpt_std
    #                                 | children_mean | children_std | heuristic
    W1, b1 = params['W1'], params['b1']
    s = G + 3
    W1_preT = jnp.concatenate([W1[:s], W1[s + 4:]], axis=0).T                # [H1, G+3+E]
    # columns ordered to match stat5 = [mean_cpt, mean_children, std_cpt, std_children, 1]
    W1_statb1 = jnp.stack([W1[s], W1[s + 2], W1[s + 1], W1[s + 3], b1], axis=1)      # [H1, 5]
    W2aug = jnp.concatenate([params['W2'].T, params['b2'][:, None]], axis=1)          # [H2, H1+1]
    W3aug = jnp.concatenate([params['W3'].T, params['b3'].reshape(1, 1)], axis=1)     # [1, H2+1]

    out = pl.pallas_call(
        heuristic_policy_kernel,
        out_shape=jax.ShapeDtypeStruct((1, R), jnp.float32),
        in_specs=[pl.BlockSpec(memory_space=pltpu.MemorySpace.VMEM)] * 6,
        out_specs=pl.BlockSpec(memory_space=pltpu.MemorySpace.VMEM),
    )(slab, preT, W1_preT, W1_statb1, W2aug, W3aug)
    return out[0]                                                            # squeeze -> [R]


def reference_forward(params, x_nodes, stage_mask, h_glob, num_heuristics):
    """Pure-JAX reference mirroring the PyTorch forward (row-major)."""
    B, G = h_glob.shape
    R = B * num_heuristics
    h_glob_rpt = jnp.repeat(h_glob, num_heuristics, axis=0)
    num_queue = jnp.minimum(jnp.sum(stage_mask.astype(jnp.int32)), 1000)
    nq_rpt = jnp.broadcast_to(params['num_queue_emb'][num_queue][None, :], (R, 3))
    mb = stage_mask.astype(bool)
    cpt = x_nodes[:, 5][mb]
    chl = x_nodes[:, 6][mb]
    col = lambda v: jnp.full((R, 1), v, jnp.float32)
    heur = jnp.repeat(params['heuristic_emb'], B, axis=0)
    x = jnp.concatenate([h_glob_rpt, nq_rpt,
                         col(jnp.mean(cpt)), col(jnp.std(cpt, ddof=1)),
                         col(jnp.mean(chl)), col(jnp.std(chl, ddof=1)),
                         heur], axis=1)
    h = jax.nn.relu(x @ params['W1'] + params['b1'])
    h = jax.nn.relu(h @ params['W2'] + params['b2'])
    return (h @ params['W3'] + params['b3'])[:, 0]


if __name__ == "__main__":
    key = jax.random.PRNGKey(0)
    num_heuristics = 8
    G, E = 8, 8          # emb_dims['glob'], emb_dims['heuristic']
    H1, H2 = 32, 16      # mlp_kwargs: hid_dims=[32, 16], act_cls='ReLU'
    N, B = 16, 2         # nodes in dag_batch, rows of h_dict['glob']
    D_in = G + 3 + 1 + 1 + 1 + 1 + E   # = 23

    keys = jax.random.split(key, 8)

    def lin_init(k, fan_in, fan_out):
        kw, kb = jax.random.split(k)
        bound = 1.0 / jnp.sqrt(jnp.float32(fan_in))
        W = jax.random.uniform(kw, (fan_in, fan_out), jnp.float32, -bound, bound)
        b = jax.random.uniform(kb, (fan_out,), jnp.float32, -bound, bound)
        return W, b

    W1, b1 = lin_init(keys[0], D_in, H1)
    W2, b2 = lin_init(keys[1], H1, H2)
    W3, b3 = lin_init(keys[2], H2, 1)
    params = dict(
        num_queue_emb=jax.random.normal(keys[3], (1001, 3), jnp.float32),
        heuristic_emb=jax.random.normal(keys[4], (num_heuristics, E), jnp.float32),
        W1=W1, b1=b1, W2=W2, b2=b2, W3=W3, b3=b3,
    )

    # Example inputs (dag_batch.x, dag_batch['stage_mask'], h_dict['glob'])
    x_nodes = jax.random.normal(keys[5], (N, 8), jnp.float32)
    stage_mask = (jax.random.uniform(keys[6], (N,)) > 0.4).astype(jnp.int32)
    stage_mask = stage_mask.at[0].set(1).at[1].set(1)   # >= 2 active stages for unbiased std
    h_glob = jax.random.normal(keys[7], (B, G), jnp.float32)

    scores = heuristic_policy_forward(params, x_nodes, stage_mask, h_glob,
                                      num_heuristics=num_heuristics)
    scores = jax.block_until_ready(scores)

    ref = reference_forward(params, x_nodes, stage_mask, h_glob, num_heuristics)
    assert scores.shape == (B * num_heuristics,)
    assert jnp.allclose(scores, ref, atol=1e-4, rtol=1e-4), (scores, ref)
    print("KERNEL_OK")
</pallas_src>

<mosaic_0001>
module attributes {stable_mosaic.version = 11 : i64} {
  func.func @heuristic_policy_kernel(%arg0: memref<3x128xf32, #tpu.memory_space<vmem>>, %arg1: memref<19x16xf32, #tpu.memory_space<vmem>>, %arg2: memref<32x19xf32, #tpu.memory_space<vmem>>, %arg3: memref<32x5xf32, #tpu.memory_space<vmem>>, %arg4: memref<16x33xf32, #tpu.memory_space<vmem>>, %arg5: memref<1x17xf32, #tpu.memory_space<vmem>>, %arg6: memref<1x16xf32, #tpu.memory_space<vmem>>) attributes {dimension_semantics = [], scalar_prefetch = 0 : i64, scratch_operands = 0 : i64, tpu.core_type = #tpu.core_type<tc>} {
    %c0 = arith.constant 0 : index
    %c0_0 = arith.constant 0 : index
    %0 = vector.load %arg0[%c0, %c0_0] : memref<3x128xf32, #tpu.memory_space<vmem>>, vector<3x128xf32>
    %cst = arith.constant dense<0.000000e+00> : vector<3xf32>
    %1 = vector.multi_reduction <add>, %0, %cst [1] : vector<3x128xf32> to vector<3xf32>
    %2 = vector.shape_cast %1 : vector<3xf32> to vector<3x1xf32>
    %3 = vector.extract_strided_slice %2 {offsets = [2, 0], sizes = [1, 1], strides = [1, 1]} : vector<3x1xf32> to vector<1x1xf32>
    %cst_1 = arith.constant 1.000000e+00 : f32
    %4 = vector.broadcast %cst_1 : f32 to vector<1x1xf32>
    %5 = arith.maximumf %3, %4 : vector<1x1xf32>
    %cst_2 = arith.constant 1.000000e+00 : f32
    %6 = vector.broadcast %cst_2 : f32 to vector<1x1xf32>
    %7 = arith.subf %5, %6 : vector<1x1xf32>
    %cst_3 = arith.constant 1.000000e+00 : f32
    %8 = vector.broadcast %cst_3 : f32 to vector<1x1xf32>
    %9 = arith.maximumf %7, %8 : vector<1x1xf32>
    %10 = vector.extract_strided_slice %2 {offsets = [0, 0], sizes = [2, 1], strides = [1, 1]} : vector<3x1xf32> to vector<2x1xf32>
    %11 = vector.broadcast %5 : vector<1x1xf32> to vector<2x1xf32>
    %12 = arith.divf %10, %11 : vector<2x1xf32>
    %13 = vector.extract_strided_slice %0 {offsets = [0, 0], sizes = [2, 128], strides = [1, 1]} : vector<3x128xf32> to vector<2x128xf32>
    %14 = vector.broadcast %12 : vector<2x1xf32> to vector<2x128xf32>
    %15 = arith.subf %13, %14 : vector<2x128xf32>
    %16 = vector.extract_strided_slice %0 {offsets = [2, 0], sizes = [1, 128], strides = [1, 1]} : vector<3x128xf32> to vector<1x128xf32>
    %17 = vector.broadcast %16 : vector<1x128xf32> to vector<2x128xf32>
    %18 = arith.mulf %15, %17 : vector<2x128xf32>
    %19 = arith.mulf %18, %18 : vector<2x128xf32>
    %cst_4 = arith.constant dense<0.000000e+00> : vector<2xf32>
    %20 = vector.multi_reduction <add>, %19, %cst_4 [1] : vector<2x128xf32> to vector<2xf32>
    %21 = vector.shape_cast %20 : vector<2xf32> to vector<2x1xf32>
    %22 = vector.broadcast %9 : vector<1x1xf32> to vector<2x1xf32>
    %23 = arith.divf %21, %22 : vector<2x1xf32>
    %24 = math.sqrt %23 : vector<2x1xf32>
    %cst_5 = arith.constant 1.000000e+00 : f32
    %25 = vector.broadcast %cst_5 : f32 to vector<1x1xf32>
    %26 = tpu.concatenate %12, %24, %25 in 0 : vector<2x1xf32>, vector<2x1xf32>, vector<1x1xf32> -> vector<5x1xf32>
    %c0_6 = arith.constant 0 : index
    %c0_7 = arith.constant 0 : index
    %27 = vector.load %arg2[%c0_6, %c0_7] : memref<32x19xf32, #tpu.memory_space<vmem>>, vector<32x19xf32>
    %c0_8 = arith.constant 0 : index
    %c0_9 = arith.constant 0 : index
    %28 = vector.load %arg1[%c0_8, %c0_9] : memref<19x16xf32, #tpu.memory_space<vmem>>, vector<19x16xf32>
    %cst_10 = arith.constant dense<0.000000e+00> : vector<32x16xf32>
    %29 = tpu.matmul %27, %28, %cst_10 {dimension_numbers = #tpu.dot_dimension_numbers<[1], [0], [0], [1], [0, 0, 1, 1], [], []>} : vector<32x19xf32>, vector<19x16xf32>, vector<32x16xf32> -> vector<32x16xf32>
    %c0_11 = arith.constant 0 : index
    %c0_12 = arith.constant 0 : index
    %30 = vector.load %arg3[%c0_11, %c0_12] : memref<32x5xf32, #tpu.memory_space<vmem>>, vector<32x5xf32>
    %cst_13 = arith.constant dense<0.000000e+00> : vector<32x1xf32>
    %31 = tpu.matmul %30, %26, %cst_13 {dimension_numbers = #tpu.dot_dimension_numbers<[1], [0], [0], [1], [0, 0, 1, 1], [], []>} : vector<32x5xf32>, vector<5x1xf32>, vector<32x1xf32> -> vector<32x1xf32>
    %32 = vector.broadcast %31 : vector<32x1xf32> to vector<32x16xf32>
    %33 = arith.addf %29, %32 : vector<32x16xf32>
    %cst_14 = arith.constant 0.000000e+00 : f32
    %34 = vector.broadcast %cst_14 : f32 to vector<32x16xf32>
    %35 = arith.maximumf %33, %34 : vector<32x16xf32>
    %c0_15 = arith.constant 0 : index
    %c0_16 = arith.constant 0 : index
    %36 = vector.load %arg4[%c0_15, %c0_16] : memref<16x33xf32, #tpu.memory_space<vmem>>, vector<16x33xf32>
    %37 = vector.extract_strided_slice %36 {offsets = [0, 0], sizes = [16, 32], strides = [1, 1]} : vector<16x33xf32> to vector<16x32xf32>
    %cst_17 = arith.constant dense<0.000000e+00> : vector<16x16xf32>
    %38 = tpu.matmul %37, %35, %cst_17 {dimension_numbers = #tpu.dot_dimension_numbers<[1], [0], [0], [1], [0, 0, 1, 1], [], []>} : vector<16x32xf32>, vector<32x16xf32>, vector<16x16xf32> -> vector<16x16xf32>
    %39 = vector.extract_strided_slice %36 {offsets = [0, 32], sizes = [16, 1], strides = [1, 1]} : vector<16x33xf32> to vector<16x1xf32>
    %40 = vector.broadcast %39 : vector<16x1xf32> to vector<16x16xf32>
    %41 = arith.addf %38, %40 : vector<16x16xf32>
    %cst_18 = arith.constant 0.000000e+00 : f32
    %42 = vector.broadcast %cst_18 : f32 to vector<16x16xf32>
    %43 = arith.maximumf %41, %42 : vector<16x16xf32>
    %c0_19 = arith.constant 0 : index
    %c0_20 = arith.constant 0 : index
    %44 = vector.load %arg5[%c0_19, %c0_20] : memref<1x17xf32, #tpu.memory_space<vmem>>, vector<1x17xf32>
    %45 = vector.extract_strided_slice %44 {offsets = [0, 0], sizes = [1, 16], strides = [1, 1]} : vector<1x17xf32> to vector<1x16xf32>
    %cst_21 = arith.constant dense<0.000000e+00> : vector<1x16xf32>
    %46 = tpu.matmul %45, %43, %cst_21 {dimension_numbers = #tpu.dot_dimension_numbers<[1], [0], [0], [1], [0, 0, 1, 1], [], []>} : vector<1x16xf32>, vector<16x16xf32>, vector<1x16xf32> -> vector<1x16xf32>
    %47 = vector.extract_strided_slice %44 {offsets = [0, 16], sizes = [1, 1], strides = [1, 1]} : vector<1x17xf32> to vector<1x1xf32>
    %48 = vector.broadcast %47 : vector<1x1xf32> to vector<1x16xf32>
    %49 = arith.addf %46, %48 : vector<1x16xf32>
    %c0_22 = arith.constant 0 : index
    %c0_23 = arith.constant 0 : index
    %50 = vector.load %arg6[%c0_22, %c0_23] : memref<1x16xf32, #tpu.memory_space<vmem>>, vector<1x16xf32>
    tpu.vector_store %arg6[%c0_22, %c0_23], %49 {strides = array<i32>} : memref<1x16xf32, #tpu.memory_space<vmem>>, vector<1x16xf32>,
    return
  }
}

</mosaic_0001>

<bundles_post_ra>
// kernel: heuristic_policy_forward.1
= control target key start
LH: loop header
LB: loop body
LE: loop exit
PB: predicated region body
PF: predicated region fallthrough
CT: control target
= control target key end

     0   :  { %vm25_vm0 = vcmask 1042432   ;;  %s747_s0 = inlined_call_operand.vmem [shape: f32[3,128], index: 0, kind: input, shape index: {}]   ;;  %s748_s1 = inlined_call_operand.vmem [shape: f32[19,16], index: 1, kind: input, shape index: {}]   ;;  %s749_s2 = inlined_call_operand.vmem [shape: f32[32,19], index: 2, kind: input, shape index: {}]   ;;  %s750_s3 = inlined_call_operand.vmem [shape: f32[32,5], index: 3, kind: input, shape index: {}]   ;;  %s751_s4 = inlined_call_operand.vmem [shape: f32[16,33], index: 4, kind: input, shape index: {}]   ;;  %s752_s5 = inlined_call_operand.vmem [shape: f32[1,17], index: 5, kind: input, shape index: {}]   ;;  %s753_s6 = inlined_call_operand.hbm [shape: f32[1,16], index: 6, kind: output, shape index: {}]  }
   0x1   :  { %v24_v0 = vld [vmem:[%s747_s0] sm:$0x7] }
   0x2   :  { %11 = vsyncpa [#allocation3], 0  ;;  %v26_v1 = vsel %vm25_vm0, %v24_v0, 0.0  ;;  %v32_v2 = vlaneseq  ;;  %vm45_vm1 = vcmask 1041408   ;;  %v75_v15 = vld [vmem:[%s750_s3] sm:$0xff]  ;;  %vm79_vm2 = vcmask 39936  }
   0x3   :  { %27 = vadd.xlane.f32.xlu0 %v26_v1  ;;  %536 = vmatprep.mubr.msk.f32.mxu0 %vm79_vm2, %v75_v15  ;;  %v72_v16 = vld [vmem:[%s748_s1] sm:$0xff]  ;;  %v73_v17 = vld [vmem:[%s748_s1 + $0x8] sm:$0xff]  ;;  %vm201_vm3 = vcmask 154624   ;;  %v629_v20 = vmov 0   ;;  %v74_v21 = vld [vmem:[%s748_s1 + $0x10] sm:$0x7] }
   0x4   :  { %v675_v3 = vshrl.u32 %v32_v2, 7  ;;  %v572_v18 = vpack.c.bf16 %v73_v17, %v72_v16  ;;  %v68_v19 = vld [vmem:[%s749_s2] sm:$0xff]  ;;  %594 = vset.pattern.permute.xlu1 %v629_v20  ;;  %595 = vset.pattern.permute.xlu0 %v629_v20  ;;  %v69_v22 = vld [vmem:[%s749_s2 + $0x8] sm:$0xff]  ;;  %v70_v23 = vld [vmem:[%s749_s2 + $0x10] sm:$0xff]  ;;  %vm66_vm6 = vcmask 1043456   ;;  %vm92_vm7 = vcmask 1044480  }
   0x5   :  { %548 = vmatprep.mubr.msk.f32.mxu1 %vm201_vm3, %v68_v19  ;;  %v71_v24 = vld [vmem:[%s749_s2 + $0x18] sm:$0xff]  ;;  %v76_v39 = vld [vmem:[%s750_s3 + $0x8] sm:$0xff]  ;;  %v77_v40 = vld [vmem:[%s750_s3 + $0x10] sm:$0xff]  ;;  %vm318_vm8 = vcmask 261120   ;;  %v630_v51 = vmov 32   ;;  %vm632_vm9 = vmmov 0  }
   0x6   :  { %v34_v4 = vsub.s32 2, %v675_v3  ;;  %573 = vmatprep.subr.bf16.mxu1 %v572_v18  ;;  %v78_v41 = vld [vmem:[%s750_s3 + $0x18] sm:$0xff]  ;;  %v306_v50 = vld [vmem:[%s751_s4] sm:$0xff]  ;;  %v307_v52 = vld [vmem:[%s751_s4 + $0x8] sm:$0xff]  ;;  %vm410_vm10 = vcmask 130048   ;;  %v408_v17 = vsub.s32 0, %v675_v3 }
   0x7   :  { %575 = vmatpush3.bf16.msra.mxu1 %v572_v18  ;;  %vm483_vm11 = vcmask 122880  }
   0x8   :  { %v42_v9 = vrot.slane %v24_v0, %v34_v4  ;;  %546 = vmatprep.subr.msk.mxu1 %vm25_vm0, %v74_v21 }
   0xb   :  { %547 = vmatpush3.msk.msra.mxu1 %vm25_vm0, %v74_v21 }
   0xc   :  { %549 = vmatmul.mubr.msk.f32.vlgmr.msra.gmra.mrb[0].mxu1 %vm201_vm3, %v69_v22 }
   0xd   :  { %551 = vmatprep.mubr.msk.f32.mxu1 %vm201_vm3, %v70_v23 }
  0x10   :  { %552 = vmatmul.mubr.msk.f32.gmra.mrb[2].mxu1 %vm201_vm3, %v71_v24 }
  0x90   :  { %v28_v5 = vpop.xlane.xlu0 %27 }
  0x91   :  { %v29_v6 = vmax.f32 %v28_v5, 1.0 }
  0x93   :  { %v35_v7 = vrot.slane %v29_v6, %v34_v4  ;;  %v499_v25 = vadd.f32 -1.0, %v29_v6  ;;  %v400_v6 = vld [vmem:[%s752_s5] sm:$0x1]  ;;  %s635_s5 = smov [#allocation2]  }
  0x94   :  { %s491_s22 = sshll.u32 %s635_s5, 4  ;;  %s492_s22 = int_to_ptr.vmem [resolvable:$true] %s491_s22 }
  0x95   :  { %599 = vrcp.f32 %v35_v7  ;;  %v31_v26 = vmax.f32 %v499_v25, 1.0  ;;  %v634_v7 = vmov 16   ;;  %s605_s0 = scalar_lea.vmem %s492_s22, 16  ;;  %s609_s23 = scalar_lea.vmem %s492_s22, 32 }
  0x96   :  { %p606_p0 = scmp.ne.s32.totalorder %s492_s22, %s605_s0  ;;  %p610_p1 = scmp.lt.s32.totalorder %s492_s22, %s492_s22 }
  0x97   :  { %v52_v27 = vrot.slane %v31_v26, %v34_v4  ;;  %v631_v4 = vmov 0.0|0.0   ;;  %p611_p2 = scmp.lt.s32.totalorder %s609_s23, %s605_s0 }
  0x99   :  { %601 = vrcp.f32 %v52_v27  ;;  %p612_p3 = por %p611_p2, %p610_p1 }
  0x9b   :  { %p613_p4 = pnand %p612_p3, %p606_p0 }
  0x9f   :  { %v600_v8 = vpop.eup %599 }
  0xa0   :  { %v37_v10 = vmul.f32 %v600_v8, %v28_v5  ;;  %v633_v5 = vmov 0.0  }
  0xa2   :  { %v38_v11 = vsub.f32 %v24_v0, %v37_v10 }
  0xa3   :  { %v602_v28 = vpop.eup %601 }
  0xa4   :  { %v43_v12 = vmul.f32 %v42_v9, %v38_v11 }
  0xa6   :  { %v44_v13 = vmul.f32 %v43_v12, %v43_v12 }
  0xa8   :  { %v46_v14 = vsel %vm45_vm1, %v44_v13, 0.0 }
  0xa9   :  { %47 = vadd.xlane.f32.xlu0 %v46_v14 }
  0xdf   :  { %v550_v42 = vpop.f32.mrb[0].mxu1 }
  0xe0   :  { %v283_v45 = vpop.f32.mrb[1].mxu1 }
  0xe3   :  { %v553_v48 = vpop.f32.mrb[2].mxu1 }
  0xe4   :  { %v293_v49 = vpop.f32.mrb[3].mxu1 }
 0x136   :  { %v48_v29 = vpop.xlane.xlu0 %47 }
 0x137   :  { %v54_v30 = vmul.f32 %v602_v28, %v48_v29 }
 0x139   :  { %603 = vrsqrt.f32 %v54_v30  ;;  %vm57_vm4 = vcmp.eq.f32.partialorder %v54_v30, inf  ;;  %v60_v33 = vand.u32 2147483648, %v54_v30  ;;  %vm59_vm5 = vcmp.eq.f32.partialorder %v54_v30, 0.0 }
 0x143   :  { %v604_v31 = vpop.eup %603 }
 0x144   :  { %v56_v32 = vmul.f32 %v604_v31, %v54_v30 }
 0x146   :  { %v58_v34 = vsel %vm57_vm4, %v54_v30, %v56_v32 }
 0x147   :  { %v61_v35 = vsel %vm59_vm5, %v60_v33, %v58_v34 }
 0x148   :  { %v63_v36 = vrot.slane %v61_v35, 6 }
 0x14a   :  { %v65_v37 = vsel %vm45_vm1, %v37_v10, %v63_v36 }
 0x14b   :  { %v67_v38 = vsel %vm66_vm6, %v65_v37, 1.0 }
 0x14c   :  { %534 = vmatprep.subr.msk.mxu0 %vm92_vm7, %v67_v38 }
 0x14d   :  { %535 = vmatpush3.msk.msra.mxu0 %vm92_vm7, %v67_v38 }
 0x14e   :  { %537 = vmatmul.mubr.msk.f32.vlgmr.msra.gmra.mrb[0].mxu0 %vm79_vm2, %v76_v39 }
 0x14f   :  { %539 = vmatprep.mubr.msk.f32.mxu0 %vm79_vm2, %v77_v40 }
 0x152   :  { %540 = vmatmul.mubr.msk.f32.gmra.mrb[2].mxu0 %vm79_vm2, %v78_v41 }
 0x153   :  { %562 = vmatprep.mubr.msk.f32.mxu0 %vm318_vm8, %v306_v50 }
 0x221   :  { %v538_v43 = vpop.f32.mrb[0].mxu0 }
 0x222   :  { %188 = vperm.xlu1 %594, %v538_v43   ;;  %v162_v44 = vpop.f32.mrb[1].mxu0 }
 0x225   :  { %v541_v46 = vpop.f32.mrb[2].mxu0 }
 0x226   :  { %183 = vperm.xlu1 %594, %v162_v44   ;;  %v172_v47 = vpop.f32.mrb[3].mxu0 }
 0x227   :  { %193 = vperm.xlu0 %595, %v172_v47  }
 0x22a   :  { %198 = vperm.xlu1 %594, %v541_v46  }
 0x22b   :  { %598 = vset.pattern.permute.xlu0 %v634_v7 }
 0x22e   :  { %596 = vset.pattern.permute.xlu1 %v630_v51 }
 0x22f   :  { %310 = vperm.xlu1 %596, %v306_v50  }
 0x233   :  { %315 = vperm.xlu1 %596, %v307_v52  }
 0x237   :  { %597 = vset.pattern.permute.xlu1 %v634_v7 }
 0x238   :  { %403 = vperm.xlu1 %597, %v400_v6  }
 0x2a1   :  { %v189_v53 = vpop.permute.xlu1 %188 }
 0x2a2   :  { %v289_v54 = vadd.f32 %v550_v42, %v189_v53 }
 0x2a4   :  { %v303_v59 = vmax.f32 %v289_v54, 0.0 }
 0x2a5   :  { %v184_v55 = vpop.permute.xlu1 %183 }
 0x2a6   :  { %v284_v56 = vadd.f32 %v283_v45, %v184_v55  ;;  %v194_v57 = vpop.permute.xlu0 %193 }
 0x2a7   :  { %v294_v58 = vadd.f32 %v293_v49, %v194_v57 }
 0x2a8   :  { %v302_v60 = vmax.f32 %v284_v56, 0.0 }
 0x2a9   :  { %v199_v61 = vpop.permute.xlu1 %198  ;;  %v304_v63 = vmax.f32 %v294_v58, 0.0 }
 0x2aa   :  { %v576_v62 = vpack.c.bf16 %v303_v59, %v302_v60  ;;  %v299_v0 = vadd.f32 %v553_v48, %v199_v61 }
 0x2ac   :  { %v305_v1 = vmax.f32 %v299_v0, 0.0  ;;  %577 = vmatprep.subr.bf16.mxu0 %v576_v62 }
 0x2ad   :  { %579 = vmatpush3.bf16.msra.mxu0 %v576_v62 }
 0x2ae   :  { %v580_v2 = vpack.c.bf16 %v305_v1, %v304_v63  ;;  %v311_v8 = vpop.permute.xlu1 %310 }
 0x2b0   :  { %581 = vmatprep.subr.bf16.mxu0 %v580_v2 }
 0x2b1   :  { %583 = vmatpush3.bf16.msra.mxu0 %v580_v2 }
 0x2b2   :  { %584 = vmatprep.subr.bf16.mxu0 %v631_v4  ;;  %v316_v9 = vpop.permute.xlu1 %315 }
 0x2b4   :  { %563 = vmatmul.mubr.msk.f32.vlgmr.msra.gmra.mrb[4].mxu0 %vm318_vm8, %v307_v52 }
 0x2b5   :  { %569 = vmatprep.mubr.msk.f32.mxu0 %vm632_vm9, %v633_v5 }
 0x2b7   :  { %v404_v18 = vpop.permute.xlu1 %403 }
 0x2b8   :  { %v409_v19 = vrot.slane %v404_v18, %v408_v17 }
 0x387   :  { %v564_v10 = vpop.f32.mrb[4].mxu0 }
 0x388   :  { %v395_v11 = vadd.f32 %v564_v10, %v316_v9  ;;  %v389_v12 = vpop.f32.mrb[5].mxu0 }
 0x389   :  { %v390_v13 = vadd.f32 %v389_v12, %v311_v8 }
 0x38a   :  { %v399_v14 = vmax.f32 %v395_v11, 0.0 }
 0x38b   :  { %v398_v15 = vmax.f32 %v390_v13, 0.0 }
 0x38d   :  { %v585_v16 = vpack.c.bf16 %v399_v14, %v398_v15 }
 0x38f   :  { %586 = vmatpush3.bf16.msra.mxu0 %v585_v16 }
 0x392   :  { %570 = vmatmul.mubr.msk.f32.vlgmr.msra.gmra.mrb[6].mxu0 %vm410_vm10, %v400_v6 }
 0x465   :  { %v479_v20 = vpop.f32.mrb[6].mxu0 }
 0x466   :  { %v480_v21 = vadd.f32 %v479_v20, %v409_v19  ;;  %v571_v22 = vpop.f32.mrb[7].mxu0 }
 0x468   :  { %484 = vst.msk [vmem:[#allocation2] sm:$0x1] %vm483_vm11, %v480_v21 }
 0x469   :  { %616 = shalt.err (!%p613_p4)
}
 0x46a   :  { %s617_s26 = scalar_lea.hbm %s753_s6, 16 }
 0x46b   :  { %p618_p5 = scmp.ne.s32.totalorder %s753_s6, %s617_s26  ;;  %p621_p6 = scmp.lt.u32.totalorder %s617_s26, %s753_s6 }
 0x46d   :  { %p623_p7 = pnand %p621_p6, %p618_p5 }
 0x46f   :  { %626 = shalt.err (!%p623_p7)
}
 0x470   :  { %494 = dma.vmem_to_hbm [thread:$0]  %s492_s22, 16, %s753_s6, [#allocation3]  }
 0x471   :  { %627 = dma.done.wait [#allocation3], 16  }
 0x472   :  { %628 = vsyncadd [#allocation3], 4294967280 }
 0x473   :  { %498 = vsyncpa [#allocation3], 1 }

</bundles_post_ra>
